<compile_context>
chip_gen: v7x
topology: tpu7x:2x2x1
jax: 0.10.0
libtpu: 0.0.40
codegen_flags: <defaults>
</compile_context>

<pallas_src>
import math
import numpy as np
import jax
import jax.numpy as jnp
from jax import lax
from jax.experimental import pallas as pl
from jax.experimental.pallas import tpu as pltpu

NEG = -1.0e30      # "log zero" (finite, so inf-inf NaNs never appear)
S_PAD = 128        # padded extended-label length (one full lane vector)


def _round_up(x, m):
    return ((x + m - 1) // m) * m


def _choose_bb(b):
    """Utterances per recursion grid step (multiple of 8).

    Wider => each alpha update works on several independent (8,128) f32 vregs
    (hides EUP/XLU latency of the serial chain).  But keep >= 2 groups when
    the batch allows it so the 'parallel' group axis can still shard across
    v7x's two TensorCores; on v5e/v6e (1 TC) the extra group costs nothing.
    """
    b8 = _round_up(max(int(b), 1), 8)
    if b8 <= 8:
        return 8
    if b8 <= 48:
        return max(8, _round_up(b8 // 2, 8))     # two groups
    return 32                                    # >= 2 groups of 32


def _vmem_limit(request_bytes):
    """Generation-aware scoped-VMEM limit (leaves headroom on v7x's 64 MiB)."""
    try:
        cap = int(pltpu.get_tpu_info().vmem_capacity_bytes)
    except Exception:
        cap = 64 * 1024 * 1024                   # assume v7x (smallest VMEM)
    return int(max(16 * 1024 * 1024, min(int(request_bytes), (cap * 3) // 4)))


# ---------------------------------------------------------------------------
# Kernel 1: ctc_lo projection + online log-softmax + extended-label gather.
# ---------------------------------------------------------------------------
def _proj_gather_kernel(perm_ref, x_ref, w_ref, b_ref, wg_ref, bg_ref,
                        lab_ref, m_sc, s_sc):
    # grid = (utterance b, time tile t, class tile c); c innermost ("arbitrary")
    c = pl.program_id(2)
    x = x_ref[...]                                               # (tile_t, E) bf16
    logits = jnp.dot(x, w_ref[...],
                     preferred_element_type=jnp.float32) + b_ref[...]
    m_chunk = jnp.max(logits, axis=-1, keepdims=True)            # (tile_t, 1)

    @pl.when(c == 0)
    def _():
        m_sc[...] = jnp.full(m_sc.shape, NEG, m_sc.dtype)
        s_sc[...] = jnp.zeros(s_sc.shape, s_sc.dtype)

    # online (running) log-sum-exp across class chunks
    m_prev = m_sc[...]
    m_new = jnp.maximum(m_prev, m_chunk)
    s_sc[...] = (s_sc[...] * jnp.exp(m_prev - m_new)
                 + jnp.sum(jnp.exp(logits - m_new), axis=-1, keepdims=True))
    m_sc[...] = m_new

    @pl.when(c == pl.num_programs(2) - 1)
    def _():
        # gathered logits of the extended label sequence: x @ W[:, ext] + b[ext]
        gathered = jnp.dot(x, wg_ref[...],
                           preferred_element_type=jnp.float32) + bg_ref[...]
        lse = m_sc[...] + jnp.log(s_sc[...])
        lab_ref[...] = gathered - lse                            # f32, lane-dense


def proj_gather(perm, x, w, bias, wg, bg, tile_t, tile_c, b_pad):
    B, T_pad, E = x.shape
    C_pad = w.shape[1]
    S = wg.shape[2]
    foot = (2 * tile_t * E * 2 + 2 * E * tile_c * 2 + 2 * tile_c * 4
            + 2 * E * S * 2 + 2 * S * 4 + 2 * tile_t * S * 4
            + tile_t * tile_c * 4 + 4 * tile_t * 4)
    return pl.pallas_call(
        _proj_gather_kernel,
        out_shape=jax.ShapeDtypeStruct((b_pad, T_pad, S), jnp.float32),
        grid_spec=pltpu.PrefetchScalarGridSpec(
            num_scalar_prefetch=1,                 # perm: sorted row -> source row
            grid=(B, T_pad // tile_t, C_pad // tile_c),
            in_specs=[
                pl.BlockSpec((pl.Squeezed(), tile_t, E),
                             lambda b, t, c, perm: (perm[b], t, 0)),
                pl.BlockSpec((E, tile_c), lambda b, t, c, perm: (0, c)),
                pl.BlockSpec((1, tile_c), lambda b, t, c, perm: (0, c)),
                pl.BlockSpec((pl.Squeezed(), E, S),
                             lambda b, t, c, perm: (b, 0, 0)),
                pl.BlockSpec((pl.Squeezed(), 1, S),
                             lambda b, t, c, perm: (b, 0, 0)),
            ],
            out_specs=pl.BlockSpec((pl.Squeezed(), tile_t, S),
                                   lambda b, t, c, perm: (b, t, 0)),
            scratch_shapes=[pltpu.VMEM((tile_t, 1), jnp.float32),
                            pltpu.VMEM((tile_t, 1), jnp.float32)],
        ),
        compiler_params=pltpu.CompilerParams(
            dimension_semantics=("parallel", "parallel", "arbitrary"),
            vmem_limit_bytes=_vmem_limit(3 * foot)),
    )(perm, x, w, bias, wg, bg)


# ---------------------------------------------------------------------------
# Kernel 2: CTC alpha recursion, BB utterances per grid step, time-chunked lab.
#   NOTE: lanes s >= 2*L+1 carry blank log-probs (finite) and can never flow
#   back into valid lanes (shifts only move low->high s); they are excluded by
#   the terminal bias.  Padded batch rows (never written by kernel 1) stay
#   confined to their own row and their nll is dropped on the host.
# ---------------------------------------------------------------------------
def _ctc_alpha_kernel(tmax_ref, lab_ref, ilen_ref, bias2_ref, finb_ref,
                      nll_ref, alpha_sc):
    g = pl.program_id(0)
    tc = pl.program_id(1)
    bb, t_chunk, S = lab_ref.shape
    t0 = tc * t_chunk

    @pl.when(tc == 0)
    def _():
        # alpha_{-1}: 0 at s=0, "log zero" elsewhere.  Running the ordinary
        # recursion step at t=0 then reproduces the textbook initialization
        # (alpha_0[0]=lab[0,blank], alpha_0[1]=lab[0,y1], rest ~NEG), so every
        # time chunk uses the same static-bound loop (no t=0 special case).
        pos0 = lax.broadcasted_iota(jnp.int32, (bb, S), 1)
        alpha_sc[...] = jnp.where(pos0 == 0, 0.0, NEG)

    @pl.when(t0 < tmax_ref[g])                  # skip chunks past group max ilen
    def _():
        ilen = ilen_ref[...]                                      # (bb, 1) int32
        pos = lax.broadcasted_iota(jnp.int32, (bb, S), 1)
        bias1 = jnp.where(pos >= 1, 0.0, NEG)   # additive mask: s-1 allowed?
        bias2 = bias2_ref[...]                  # additive mask: s-2 allowed?

        def step(i, alpha):
            lab_t = lab_ref[:, i, :]                              # (bb, S)
            prev1 = pltpu.roll(alpha, 1, axis=1) + bias1          # alpha[s-1]
            prev2 = pltpu.roll(alpha, 2, axis=1) + bias2          # alpha[s-2]
            m = jnp.maximum(jnp.maximum(alpha, prev1), prev2)
            lse = m + jnp.log(jnp.exp(alpha - m) + jnp.exp(prev1 - m)
                              + jnp.exp(prev2 - m))
            # rows whose utterance already ended keep their alpha unchanged
            return jnp.where(t0 + i < ilen, lse + lab_t, alpha)

        alpha_sc[...] = lax.fori_loop(0, t_chunk, step, alpha_sc[...],
                                      unroll=2)

    @pl.when(tc == pl.num_programs(1) - 1)
    def _():
        # log-likelihood = logsumexp over the two terminal positions
        masked = alpha_sc[...] + finb_ref[...]
        m = jnp.max(masked, axis=1, keepdims=True)
        ll = m + jnp.log(jnp.sum(jnp.exp(masked - m), axis=1, keepdims=True))
        nll_ref[...] = jnp.broadcast_to(-ll, nll_ref.shape)       # lane-dense


def ctc_alpha_nll(group_tmax, lab, ilens_col, bias2, finb, bb, t_chunk):
    B_pad, T_pad, S = lab.shape
    assert B_pad % bb == 0 and T_pad % t_chunk == 0
    num_groups = B_pad // bb
    num_chunks = T_pad // t_chunk
    foot = 2 * bb * t_chunk * S * 4 + 6 * bb * S * 4 + 2 * bb * 4
    nll = pl.pallas_call(
        _ctc_alpha_kernel,
        out_shape=jax.ShapeDtypeStruct((B_pad, S), jnp.float32),
        grid_spec=pltpu.PrefetchScalarGridSpec(
            num_scalar_prefetch=1,                 # per-group max ilen -> SMEM
            grid=(num_groups, num_chunks),
            in_specs=[
                pl.BlockSpec((bb, t_chunk, S), lambda g, tc, tm: (g, tc, 0)),
                pl.BlockSpec((bb, 1), lambda g, tc, tm: (g, 0)),
                pl.BlockSpec((bb, S), lambda g, tc, tm: (g, 0)),
                pl.BlockSpec((bb, S), lambda g, tc, tm: (g, 0)),
            ],
            out_specs=pl.BlockSpec((bb, S), lambda g, tc, tm: (g, 0)),
            scratch_shapes=[pltpu.VMEM((bb, S), jnp.float32)],
        ),
        compiler_params=pltpu.CompilerParams(
            dimension_semantics=("parallel", "arbitrary"),
            vmem_limit_bytes=_vmem_limit(3 * foot)),
    )(group_tmax, lab, ilens_col, bias2, finb)
    return nll[:, 0]


# ---------------------------------------------------------------------------
# Host-side glue: extended-label tables + the CTC "module".
# ---------------------------------------------------------------------------
def build_ctc_tables(ys_sorted, w, bias, b_pad):
    """Per-utterance gathered weights/bias + transition/terminal bias tables.

    Returns (for the length-sorted batch order the kernels use):
      wg    (B, E, S_PAD)  bf16  W[:, ext_b]   (padded lanes -> blank column)
      bg    (B, 1, S_PAD)  f32   bias[ext_b]
      bias2 (B_pad, S_PAD) f32   0 where the alpha[t-1, s-2] transition is
                                 allowed, NEG elsewhere
      finb  (B_pad, S_PAD) f32   0 at the two terminal positions, NEG elsewhere
    """
    B = len(ys_sorted)
    ext_ids = np.zeros((B, S_PAD), np.int32)          # blank-padded
    bias2 = np.full((b_pad, S_PAD), NEG, np.float32)
    finb = np.full((b_pad, S_PAD), NEG, np.float32)
    for bi, y in enumerate(ys_sorted):
        y = np.asarray(y, np.int32)
        S = 2 * len(y) + 1
        if S > S_PAD:
            raise ValueError(
                f"extended label length {S} exceeds S_PAD={S_PAD} "
                f"(max {(S_PAD - 1) // 2} labels per utterance)")
        ext = np.zeros(S, np.int32)        # blank(=0)-interleaved labels
        ext[1::2] = y
        ext_ids[bi, :S] = ext
        for s in range(2, S):
            if ext[s] != 0 and ext[s] != ext[s - 2]:
                bias2[bi, s] = 0.0
        finb[bi, S - 1] = 0.0
        finb[bi, S - 2] = 0.0
    ext_ids = jnp.asarray(ext_ids)
    # Wg[b] = W[:, ext_b]: tiny device-side gather -> no dense one-hot matmul.
    wg = jnp.transpose(jnp.take(w, ext_ids, axis=1), (1, 0, 2)).astype(jnp.bfloat16)
    bg = jnp.take(bias, ext_ids, axis=0).reshape(B, 1, S_PAD).astype(jnp.float32)
    return wg, bg, jnp.asarray(bias2), jnp.asarray(finb)


class CTC:
    """Pallas re-implementation of e2e_asr_attctc_th.CTC (forward only)."""

    def __init__(self, odim, eprojs, dropout_rate, key):
        self.odim = odim
        self.eprojs = eprojs
        self.dropout_rate = dropout_rate  # TODO(synk): dropout with p>0 in training mode not implemented (identity here)
        k1, k2 = jax.random.split(key)
        bound = 1.0 / math.sqrt(eprojs)
        # torch.nn.Linear(eprojs, odim): weight (odim, eprojs); stored transposed.
        self.w = jax.random.uniform(k1, (eprojs, odim), jnp.float32, -bound, bound)
        self.b = jax.random.uniform(k2, (odim,), jnp.float32, -bound, bound)

    def __call__(self, hpad, ilens, ys):
        B, T, E = hpad.shape
        ilens = np.fromiter((int(x) for x in ilens), dtype=np.int32)
        ilens = np.clip(ilens, 1, T)

        # ---- host glue: sort by length (desc) so per-group tmax is tight ---
        order = np.argsort(-ilens, kind="stable")
        ilens_s = ilens[order]
        ys_s = [ys[i] for i in order]

        bb = _choose_bb(B)
        B_pad = _round_up(B, bb)

        # time / class tiling
        tile_t = _round_up(T, 16) if T <= 256 else 512
        T_pad = _round_up(T, tile_t)
        t_chunk = min(256, tile_t)              # divides tile_t, hence T_pad
        C = self.odim
        tile_c = min(512, _round_up(C, 128))
        C_pad = _round_up(C, tile_c)

        hpad_p = jnp.pad(hpad, ((0, 0), (0, T_pad - T), (0, 0))).astype(jnp.bfloat16)
        w_p = jnp.pad(self.w, ((0, 0), (0, C_pad - C))).astype(jnp.bfloat16)
        # padded vocabulary columns get a NEG bias -> never influence the lse
        bias_p = jnp.pad(self.b, (0, C_pad - C),
                         constant_values=NEG).reshape(1, C_pad)

        wg, bg, bias2, finb = build_ctc_tables(ys_s, self.w, self.b, B_pad)
        perm = jnp.asarray(order.astype(np.int32))

        # ---- kernel 1: projection + online log-softmax + label gather ------
        # rows >= B of lab are never written; they stay confined to padded
        # utterances whose nll is dropped below.
        lab = proj_gather(perm, hpad_p, w_p, bias_p, wg, bg,
                          tile_t, tile_c, B_pad)            # (B_pad, T_pad, S)

        # ---- kernel 2: alpha recursion (BB rows per step, time-chunked) ----
        ilens_pad = np.concatenate(
            [ilens_s, np.ones(B_pad - B, np.int32)]).astype(np.int32)
        group_tmax = ilens_pad.reshape(-1, bb).max(axis=1).astype(np.int32)
        nll = ctc_alpha_nll(jnp.asarray(group_tmax), lab,
                            jnp.asarray(ilens_pad.reshape(-1, 1)),
                            bias2, finb, bb, t_chunk)
        # warp-ctc sums the per-utterance losses; _ChainerLikeCTC divides by B.
        # (The sum is order-invariant, so no inverse permutation is needed.)
        return jnp.sum(nll[:B]) / B


# ---------------------------------------------------------------------------
# Independent numpy reference (float64) for verification.
# ---------------------------------------------------------------------------
def _ctc_ref(hpad, w, b, ilens, ys):
    hpad = np.asarray(hpad, np.float64)
    w = np.asarray(w, np.float64)
    b = np.asarray(b, np.float64)
    total = 0.0
    for bi, y in enumerate(ys):
        T_b = int(ilens[bi])
        logits = hpad[bi, :T_b] @ w + b
        mx = logits.max(-1, keepdims=True)
        lp = logits - (mx + np.log(np.exp(logits - mx).sum(-1, keepdims=True)))
        ext = [0]
        for l in y:
            ext += [int(l), 0]
        S = len(ext)
        alpha = np.full(S, NEG)
        alpha[0] = lp[0, ext[0]]
        alpha[1] = lp[0, ext[1]]
        for t in range(1, T_b):
            new = np.empty(S)
            for s in range(S):
                terms = [alpha[s]]
                if s >= 1:
                    terms.append(alpha[s - 1])
                if s >= 2 and ext[s] != 0 and ext[s] != ext[s - 2]:
                    terms.append(alpha[s - 2])
                m = max(terms)
                new[s] = m + np.log(sum(np.exp(x - m) for x in terms)) + lp[t, ext[s]]
            alpha = new
        m = max(alpha[-1], alpha[-2])
        total += -(m + np.log(np.exp(alpha[-1] - m) + np.exp(alpha[-2] - m)))
    return total / len(ys)


if __name__ == "__main__":
    B, T, E, odim = 2, 8, 32, 8
    key = jax.random.PRNGKey(0)
    k_h, k_p = jax.random.split(key)

    hpad = jax.random.normal(k_h, (B, T, E), jnp.float32)   # (batch, time, eprojs)
    ilens = [8, 6]                                          # input lengths
    ys = [np.array([3, 1, 4], dtype=np.int32),              # targets (blank = 0)
          np.array([2, 2], dtype=np.int32)]

    ctc = CTC(odim, E, dropout_rate=0.0, key=k_p)
    loss = ctc(hpad, ilens, ys)
    loss = jax.block_until_ready(loss)

    ref = _ctc_ref(np.asarray(hpad), np.asarray(ctc.w), np.asarray(ctc.b), ilens, ys)
    # Only the single bf16 projection matmul deviates from f32 now.
    np.testing.assert_allclose(float(loss), ref, rtol=2e-2, atol=2e-2)
    print("KERNEL_OK")
</pallas_src>

<mosaic_0001>
module attributes {stable_mosaic.version = 11 : i64} {
  func.func @_proj_gather_kernel(%arg0: i32, %arg1: i32, %arg2: i32, %arg3: memref<2xi32, #tpu.memory_space<smem>>, %arg4: memref<1x16x32xbf16, #tpu.memory_space<vmem>>, %arg5: memref<32x128xbf16, #tpu.memory_space<vmem>>, %arg6: memref<1x128xf32, #tpu.memory_space<vmem>>, %arg7: memref<1x32x128xbf16, #tpu.memory_space<vmem>>, %arg8: memref<1x1x128xf32, #tpu.memory_space<vmem>>, %arg9: memref<1x16x128xf32, #tpu.memory_space<vmem>>, %arg10: memref<16x1xf32, #tpu.memory_space<vmem>>, %arg11: memref<16x1xf32, #tpu.memory_space<vmem>>) attributes {dimension_semantics = [#tpu.dimension_semantics<parallel>, #tpu.dimension_semantics<parallel>, #tpu.dimension_semantics<arbitrary>], iteration_bounds = array<i64: 2, 1, 1>, scalar_prefetch = 1 : i64, scratch_operands = 2 : i64, tpu.core_type = #tpu.core_type<tc>, window_params = [{transform_indices = @transform_0, window_bounds = array<i64: 1, 16, 32>}, {transform_indices = @transform_1, window_bounds = array<i64: 32, 128>}, {transform_indices = @transform_2, window_bounds = array<i64: 1, 128>}, {transform_indices = @transform_3, window_bounds = array<i64: 1, 32, 128>}, {transform_indices = @transform_4, window_bounds = array<i64: 1, 1, 128>}, {transform_indices = @transform_5, window_bounds = array<i64: 1, 16, 128>}]} {
    %c0 = arith.constant 0 : index
    %c0_0 = arith.constant 0 : index
    %c0_1 = arith.constant 0 : index
    %0 = vector.load %arg4[%c0, %c0_0, %c0_1] : memref<1x16x32xbf16, #tpu.memory_space<vmem>>, vector<1x16x32xbf16>
    %1 = vector.shape_cast %0 : vector<1x16x32xbf16> to vector<16x32xbf16>
    %c0_2 = arith.constant 0 : index
    %c0_3 = arith.constant 0 : index
    %2 = vector.load %arg5[%c0_2, %c0_3] : memref<32x128xbf16, #tpu.memory_space<vmem>>, vector<32x128xbf16>
    %cst = arith.constant dense<0.000000e+00> : vector<16x128xf32>
    %3 = tpu.matmul %1, %2, %cst {dimension_numbers = #tpu.dot_dimension_numbers<[1], [0], [0], [1], [0, 0, 1, 1], [], []>} : vector<16x32xbf16>, vector<32x128xbf16>, vector<16x128xf32> -> vector<16x128xf32>
    %c0_4 = arith.constant 0 : index
    %c0_5 = arith.constant 0 : index
    %4 = vector.load %arg6[%c0_4, %c0_5] : memref<1x128xf32, #tpu.memory_space<vmem>>, vector<1x128xf32>
    %5 = vector.broadcast %4 : vector<1x128xf32> to vector<16x128xf32>
    %6 = arith.addf %3, %5 : vector<16x128xf32>
    %cst_6 = arith.constant dense<0xFF800000> : vector<16xf32>
    %7 = vector.multi_reduction <maximumf>, %6, %cst_6 [1] : vector<16x128xf32> to vector<16xf32>
    %8 = vector.shape_cast %7 : vector<16xf32> to vector<16x1xf32>
    %c0_i32 = arith.constant 0 : i32
    %9 = arith.cmpi eq, %arg2, %c0_i32 : i32
    %10 = arith.extui %9 : i1 to i32
    %c0_i32_7 = arith.constant 0 : i32
    %11 = arith.cmpi ne, %10, %c0_i32_7 : i32
    scf.if %11 {
      %cst_19 = arith.constant -1.000000e+30 : f32
      %29 = vector.broadcast %cst_19 : f32 to vector<16x1xf32>
      %c0_20 = arith.constant 0 : index
      %c0_21 = arith.constant 0 : index
      %30 = vector.load %arg10[%c0_20, %c0_21] : memref<16x1xf32, #tpu.memory_space<vmem>>, vector<16x1xf32>
      tpu.vector_store %arg10[%c0_20, %c0_21], %29 {strides = array<i32>} : memref<16x1xf32, #tpu.memory_space<vmem>>, vector<16x1xf32>,
      %cst_22 = arith.constant 0.000000e+00 : f32
      %31 = vector.broadcast %cst_22 : f32 to vector<16x1xf32>
      %c0_23 = arith.constant 0 : index
      %c0_24 = arith.constant 0 : index
      %32 = vector.load %arg11[%c0_23, %c0_24] : memref<16x1xf32, #tpu.memory_space<vmem>>, vector<16x1xf32>
      tpu.vector_store %arg11[%c0_23, %c0_24], %31 {strides = array<i32>} : memref<16x1xf32, #tpu.memory_space<vmem>>, vector<16x1xf32>,
    } else {
    }
    %c0_8 = arith.constant 0 : index
    %c0_9 = arith.constant 0 : index
    %12 = vector.load %arg10[%c0_8, %c0_9] : memref<16x1xf32, #tpu.memory_space<vmem>>, vector<16x1xf32>
    %13 = arith.maximumf %12, %8 : vector<16x1xf32>
    %c0_10 = arith.constant 0 : index
    %c0_11 = arith.constant 0 : index
    %14 = vector.load %arg11[%c0_10, %c0_11] : memref<16x1xf32, #tpu.memory_space<vmem>>, vector<16x1xf32>
    %15 = arith.subf %12, %13 : vector<16x1xf32>
    %16 = math.exp %15 : vector<16x1xf32>
    %17 = arith.mulf %14, %16 : vector<16x1xf32>
    %18 = vector.broadcast %13 : vector<16x1xf32> to vector<16x128xf32>
    %19 = arith.subf %6, %18 : vector<16x128xf32>
    %20 = math.exp %19 : vector<16x128xf32>
    %cst_12 = arith.constant dense<0.000000e+00> : vector<16xf32>
    %21 = vector.multi_reduction <add>, %20, %cst_12 [1] : vector<16x128xf32> to vector<16xf32>
    %22 = vector.shape_cast %21 : vector<16xf32> to vector<16x1xf32>
    %23 = arith.addf %17, %22 : vector<16x1xf32>
    %c0_13 = arith.constant 0 : index
    %c0_14 = arith.constant 0 : index
    %24 = vector.load %arg11[%c0_13, %c0_14] : memref<16x1xf32, #tpu.memory_space<vmem>>, vector<16x1xf32>
    tpu.vector_store %arg11[%c0_13, %c0_14], %23 {strides = array<i32>} : memref<16x1xf32, #tpu.memory_space<vmem>>, vector<16x1xf32>,
    %c0_15 = arith.constant 0 : index
    %c0_16 = arith.constant 0 : index
    %25 = vector.load %arg10[%c0_15, %c0_16] : memref<16x1xf32, #tpu.memory_space<vmem>>, vector<16x1xf32>
    tpu.vector_store %arg10[%c0_15, %c0_16], %13 {strides = array<i32>} : memref<16x1xf32, #tpu.memory_space<vmem>>, vector<16x1xf32>,
    %c0_i32_17 = arith.constant 0 : i32
    %26 = arith.cmpi eq, %arg2, %c0_i32_17 : i32
    %27 = arith.extui %26 : i1 to i32
    %c0_i32_18 = arith.constant 0 : i32
    %28 = arith.cmpi ne, %27, %c0_i32_18 : i32
    scf.if %28 {
      %c0_19 = arith.constant 0 : index
      %c0_20 = arith.constant 0 : index
      %c0_21 = arith.constant 0 : index
      %29 = vector.load %arg7[%c0_19, %c0_20, %c0_21] : memref<1x32x128xbf16, #tpu.memory_space<vmem>>, vector<1x32x128xbf16>
      %30 = vector.shape_cast %29 : vector<1x32x128xbf16> to vector<32x128xbf16>
      %cst_22 = arith.constant dense<0.000000e+00> : vector<16x128xf32>
      %31 = tpu.matmul %1, %30, %cst_22 {dimension_numbers = #tpu.dot_dimension_numbers<[1], [0], [0], [1], [0, 0, 1, 1], [], []>} : vector<16x32xbf16>, vector<32x128xbf16>, vector<16x128xf32> -> vector<16x128xf32>
      %c0_23 = arith.constant 0 : index
      %c0_24 = arith.constant 0 : index
      %c0_25 = arith.constant 0 : index
      %32 = vector.load %arg8[%c0_23, %c0_24, %c0_25] : memref<1x1x128xf32, #tpu.memory_space<vmem>>, vector<1x1x128xf32>
      %33 = vector.shape_cast %32 : vector<1x1x128xf32> to vector<1x128xf32>
      %34 = vector.broadcast %33 : vector<1x128xf32> to vector<16x128xf32>
      %35 = arith.addf %31, %34 : vector<16x128xf32>
      %c0_26 = arith.constant 0 : index
      %c0_27 = arith.constant 0 : index
      %36 = vector.load %arg10[%c0_26, %c0_27] : memref<16x1xf32, #tpu.memory_space<vmem>>, vector<16x1xf32>
      %c0_28 = arith.constant 0 : index
      %c0_29 = arith.constant 0 : index
      %37 = vector.load %arg11[%c0_28, %c0_29] : memref<16x1xf32, #tpu.memory_space<vmem>>, vector<16x1xf32>
      %38 = math.log %37 : vector<16x1xf32>
      %39 = arith.addf %36, %38 : vector<16x1xf32>
      %40 = vector.broadcast %39 : vector<16x1xf32> to vector<16x128xf32>
      %41 = arith.subf %35, %40 : vector<16x128xf32>
      %c0_30 = arith.constant 0 : index
      %c0_31 = arith.constant 0 : index
      %c0_32 = arith.constant 0 : index
      %42 = vector.load %arg9[%c0_30, %c0_31, %c0_32] : memref<1x16x128xf32, #tpu.memory_space<vmem>>, vector<1x16x128xf32>
      %43 = vector.shape_cast %42 : vector<1x16x128xf32> to vector<16x128xf32>
      %44 = vector.shape_cast %41 : vector<16x128xf32> to vector<1x16x128xf32>
      tpu.vector_store %arg9[%c0_30, %c0_31, %c0_32], %44 {strides = array<i32>} : memref<1x16x128xf32, #tpu.memory_space<vmem>>, vector<1x16x128xf32>,
    } else {
    }
    return
  }
  func.func @transform_0(%arg0: i32, %arg1: i32, %arg2: i32, %arg3: memref<2xi32, #tpu.memory_space<smem>>) -> (i32, i32, i32) {
    %0 = arith.index_cast %arg0 : i32 to index
    %1 = memref.load %arg3[%0] : memref<2xi32, #tpu.memory_space<smem>>
    %c0_i32 = arith.constant 0 : i32
    %c0_i32_0 = arith.constant 0 : i32
    return %1, %arg1, %c0_i32 : i32, i32, i32
  }
  func.func @transform_1(%arg0: i32, %arg1: i32, %arg2: i32, %arg3: memref<2xi32, #tpu.memory_space<smem>>) -> (i32, i32) {
    %c0_i32 = arith.constant 0 : i32
    %c0_i32_0 = arith.constant 0 : i32
    return %c0_i32, %arg2 : i32, i32
  }
  func.func @transform_2(%arg0: i32, %arg1: i32, %arg2: i32, %arg3: memref<2xi32, #tpu.memory_space<smem>>) -> (i32, i32) {
    %c0_i32 = arith.constant 0 : i32
    %c0_i32_0 = arith.constant 0 : i32
    return %c0_i32, %arg2 : i32, i32
  }
  func.func @transform_3(%arg0: i32, %arg1: i32, %arg2: i32, %arg3: memref<2xi32, #tpu.memory_space<smem>>) -> (i32, i32, i32) {
    %c0_i32 = arith.constant 0 : i32
    %c0_i32_0 = arith.constant 0 : i32
    %c0_i32_1 = arith.constant 0 : i32
    return %arg0, %c0_i32, %c0_i32_0 : i32, i32, i32
  }
  func.func @transform_4(%arg0: i32, %arg1: i32, %arg2: i32, %arg3: memref<2xi32, #tpu.memory_space<smem>>) -> (i32, i32, i32) {
    %c0_i32 = arith.constant 0 : i32
    %c0_i32_0 = arith.constant 0 : i32
    %c0_i32_1 = arith.constant 0 : i32
    return %arg0, %c0_i32, %c0_i32_0 : i32, i32, i32
  }
  func.func @transform_5(%arg0: i32, %arg1: i32, %arg2: i32, %arg3: memref<2xi32, #tpu.memory_space<smem>>) -> (i32, i32, i32) {
    %c0_i32 = arith.constant 0 : i32
    %c0_i32_0 = arith.constant 0 : i32
    return %arg0, %arg1, %c0_i32 : i32, i32, i32
  }
}

</mosaic_0001>

<bundles_post_ra>
// kernel: tpu_custom_call.1
= control target key start
LH: loop header
LB: loop body
LE: loop exit
PB: predicated region body
PF: predicated region fallthrough
CT: control target
= control target key end

     0   :  { %s1591_s0 = inlined_call_operand.hbm [shape: s32[2], index: 0, kind: input, shape index: {}]   ;;  %s1592_s1 = inlined_call_operand.hbm [shape: bf16[2,16,32], index: 1, kind: input, shape index: {}]   ;;  %s1593_s2 = inlined_call_operand.hbm [shape: bf16[32,128], index: 2, kind: input, shape index: {}]   ;;  %s1594_s3 = inlined_call_operand.vmem [shape: f32[1,128], index: 3, kind: input, shape index: {}]   ;;  %s1595_s4 = inlined_call_operand.hbm [shape: bf16[2,32,128], index: 4, kind: input, shape index: {}]   ;;  %s1596_s5 = inlined_call_operand.vmem [shape: f32[2,1,128], index: 5, kind: input, shape index: {}]   ;;  %s1597_s6 = inlined_call_operand.hbm [shape: f32[8,16,128], index: 6, kind: output, shape index: {}]  }
   0x1   :  { %1610 = sst [smem:[#allocation23_spill]] %s1592_s1  ;;  %s936_s23 = scalar_lea.hbm %s1591_s0, 16 }
   0x2   :  { %1611 = sst [smem:[#allocation24_spill]] %s1593_s2  ;;  %p937_p0 = scmp.ne.s32.totalorder %s1591_s0, %s936_s23 }
   0x3   :  { %p940_p1 = scmp.lt.u32.totalorder %s936_s23, %s1591_s0 }
   0x5   :  { %p942_p2 = pnand %p940_p1, %p937_p0 }
   0x7   :  { %945 = shalt.err (!%p942_p2)  }
   0x8   :  { %s1152_s28 = smov [#allocation5]  }
   0x9   :  { %12 = dma.hbm_to_smem %s1591_s0, 16, %s1152_s28, [#allocation4] }
   0xa   :  { %1098 = dma.done.wait [#allocation4], 16 }
   0xb   :  { %1099 = vsyncadd [#allocation4], 4294967280 }
   0xc   :  { %14 = sfence }
   0xd   :  { %15 = vsyncpa [#allocation7], 0 }
   0xe   :  { %17 = vsyncpa [#allocation7 + $0x1], 0 }
   0xf   :  { %18 = vsyncpa [#allocation10], 0 }
  0x10   :  { %19 = vsyncpa [#allocation8], 0 }
  0x11   :  { %21 = vsyncpa [#allocation8 + $0x1], 0  ;;  %s1212_s7 = smov 0   ;;  %s1214_s8 = smov 0  }
  0x12   :  { %s1216_s9 = smov 0   ;;  %s1218_s10 = smov 0  }
  0x13   :  { %s1220_s11 = smov 0   ;;  %s1222_s12 = smov 0  }
  0x14   :  { %s1224_s0 = smov 0   ;;  %s1226_s13 = smov 0  }
  0x15   :  { %s1228_s14 = smov 0  }
  0x16 LB: > { %1612 = sst [smem:[#allocation20_spill]] %s1138_s12  ;;  %s46_s15 = sadd.s32 1, %s1146_s13  ;;  %s1150_s14 = sphi %s1228_s14, %s27_s14   ;;  %s1146_s13 = sphi %s1226_s13, %s1655_s13   ;;  %s1142_s0 = sphi %s1224_s0, %s1654_s0   ;;  %s1138_s12 = sphi %s1222_s12, %s1647_s12   ;;  %s1134_s11 = sphi %s1220_s11, %s1653_s11   ;;  %s1130_s10 = sphi %s1218_s10, %s1652_s10   ;;  %s1126_s9 = sphi %s1216_s9, %s1651_s9   ;;  %s1122_s8 = sphi %s1214_s8, %s1650_s8   ;;  %s1118_s7 = sphi %s1212_s7, %s1649_s7  }
  0x17   : > { %s50_s16 = sld [smem:[#allocation5 + %s1146_s13]]  ;;  %p48_p3 = scmp.ge.s32.totalorder %s46_s15, 2 }
  0x18   : > { %s57_s17 = sadd.s32 1, %s1138_s12  ;;  %p64_p4 = scmp.ne.s32.totalorder %s1138_s12, %s1134_s11 }
  0x19   : > { %p1599_p5 = scmp.eq.s32.totalorder %s1150_s14, 0  ;;  %s1657_s15 = smov (%p48_p3, %s46_s15), 0 }
  0x1a   : > { %1613 = sst [smem:[#allocation21_spill]] %s1657_s15  ;;  %p1598_p8 = scmp.lt.s32.totalorder %s1150_s14, 2 }
  0x1b   : > { %p1267_p6 = por %p1599_p5, %p64_p4  ;;  %s51_s19 = sld [smem:[#allocation5 + %s1657_s15]] }
  0x1c   : > { %s247_s20 = sand.u32 1, %s1150_s14   ;;  %s249_s21 = sand.u32 1, %s1138_s12  }
  0x1d   : > { %s752_s22 = sshll.u32 %s249_s21, 3  ;;  %p1280_p9 = pnand %p1598_p8, %p1267_p6 }
  0x1e   : > { %s804_s24 = scalar_select %p1267_p6, [#allocation5], [#allocation13] }
  0x1f   : > { %s251_s26 = scalar_lea.vmem [#allocation6], %s752_s22  ;;  %s1299_s21 = sadd.s32 4294967295, %s1150_s14  }
  0x20   : > { %s261_s27 = sshll.u32 %s251_s26, 4  ;;  %s1659_s24 = smov (!%p1598_p8, %s804_s24), [#allocation14]  ;;  %s1286_s27 = int_to_ptr.vmem [resolvable:$true] %s261_s27 }
  0x21   : > { %s52_s25 = ssub.s32 %s50_s16, %s51_s19  ;;  %s747_s16 = sadd.s32 4294967294, %s1150_s14  }
  0x22   : > { %p55_p10 = scmp.eq.s32.totalorder %s52_s25, 0  ;;  %p70_p11 = scmp.ne.s32.totalorder %s1134_s11, %s1130_s10 }
  0x23   : > { %s805_s28 = scalar_select %p1267_p6, %s1146_s13, 0 }
  0x24   : > { %s1292_s29 = scalar_select %p55_p10, %s1138_s12, %s57_s17  }
  0x25   : > { %s1661_s28 = smov (!%p1598_p8, %s805_s28), 0  ;;  %p1600_p12 = scmp.eq.s32.totalorder %s1299_s21, 0 }
  0x26   : > { %1616 = sst [smem:[#allocation22_spill]] %s1292_s29  ;;  %s1617_s1 = sld [smem:[#allocation23_spill]] }
  0x27   : > { %s252_s30 = sld [smem:[%s1659_s24 + %s1661_s28]]  ;;  %p1314_p0 = por %p1600_p12, %p70_p11 }
  0x28   : > { %s1318_s25 = scalar_lea.sflag [#allocation7], %s247_s20  ;;  %p948_p2 = pneg %p1280_p9 }
  0x29   : > { %s1618_s24 = scalar_select %p1314_p0, 1, 0 }
  0x2d   : > { %s777_s19 = sshll.u32 %s252_s30, 7  ;;  %s951_s30 = scalar_lea.hbm %s1617_s1, 256 }
  0x2e   : > { %s1310_s17 = scalar_lea.hbm %s1617_s1, %s777_s19 }
  0x2f   : > { %s946_s10 = scalar_lea.hbm %s1310_s17, 128  ;;  %p952_p6 = scmp.lt.u32.totalorder %s1310_s17, %s1617_s1 }
  0x30   : > { %p947_p1 = scmp.ne.s32.totalorder %s1310_s17, %s946_s10  ;;  %p953_p10 = scmp.lt.u32.totalorder %s951_s30, %s946_s10 }
  0x31   : > { %p955_p7 = scmp.lt.u32.totalorder %s946_s10, %s1310_s17 }
  0x32   : > { %p949_p3 = pnand %p948_p2, %p947_p1  ;;  %p954_p11 = por %p953_p10, %p952_p6 }
  0x34   : > { %p950_p4 = pneg %p949_p3  ;;  %p956_p8 = por %p955_p7, %p954_p11 }
  0x36   : > { %p957_p5 = pnand %p956_p8, %p950_p4 }
  0x38   : > { %960 = shalt.err (!%p957_p5)
}
  0x39   : > { %s961_s20 = scalar_lea.vmem %s1286_s27, 128  ;;  %s1153_s22 = smov [#allocation6]  }
  0x3a   : > { %p962_p1 = scmp.ne.s32.totalorder %s1286_s27, %s961_s20  ;;  %s966_s26 = sshll.u32 %s1153_s22, 4  ;;  %s967_s26 = int_to_ptr.vmem [resolvable:$false] %s966_s26 }
  0x3b   : > { %s968_s28 = scalar_lea.vmem %s967_s26, 256  ;;  %p969_p12 = scmp.lt.s32.totalorder %s1286_s27, %s967_s26 }
  0x3c   : > { %p964_p3 = pnand %p962_p1, %p948_p2  ;;  %p970_p6 = scmp.lt.s32.totalorder %s968_s28, %s961_s20 }
  0x3e   : > { %p965_p13 = pneg %p964_p3  ;;  %p971_p10 = por %p970_p6, %p969_p12 }
  0x40   : > { %p972_p7 = pnand %p971_p10, %p965_p13 }
  0x42   : > { %975 = shalt.err (!%p972_p7)
}
  0x43   : > { %s1601_s10 = smov 64   ;;  %s1603_s30 = smov 4  }
  0x44   : > { %823 = dma.hbm_to_vmem [thread:$0]  (!%p1280_p9), %s1310_s17, 128, %s1286_s27, %s1318_s25, %s1601_s10, %s1601_s10, %s1603_s30  }
  0x45   : > { %p1619_p5 = scmp.eq.s32.totalorder %s1299_s21, 0  ;;  %p1620_p8 = scmp.ne.s32.totalorder %s1122_s8, %s1118_s7 }
  0x46   : > { %p206_p2 = scmp.eq.s32.totalorder %s747_s16, 1  ;;  %p748_p4 = scmp.ge.s32.totalorder %s1150_s14, 1 }
  0x47   : > { %p1354_p12 = por %p1620_p8, %p1619_p5  ;;  %p213_p11 = scmp.lt.s32.totalorder %s1150_s14, 3 }
  0x48   : > { %p1622_p1 = pmov %p1620_p8  ;;  %s1156_s17 = smov [#allocation9]  }
  0x49   : > { %s1621_s19 = scalar_select %p1354_p12, 1, 0 }
  0x4a   : > { %p1366_p3 = por %p206_p2, %p1622_p1  ;;  %p1370_p9 = pnand %p748_p4, %p213_p11 }
  0x4b   : > { %s227_s18 = sshll.u32 %s1156_s17, 4  ;;  %s132_s20 = ssub.s32 %s1146_s13, %s1657_s15  ;;  %s1374_s18 = int_to_ptr.vmem [resolvable:$true] %s227_s18 }
  0x4c   : > { %s1623_s23 = scalar_select %p1366_p3, 1, 0 }
  0x4d   : > { %s1624_s27 = scalar_select %p1370_p9, 1, 0 }
  0x4e   : > { %p814_p6 = pneg %p1370_p9  ;;  %s135_s16 = sadd.s32 1, %s1126_s9 }
  0x4f   : > { %p1625_p10 = pmov %p1619_p5  ;;  %p1387_p5 = scmp.eq.s32.totalorder %s132_s20, 0 }
  0x50   : > { %s273_s28 = sand.u32 1, %s1126_s9   ;;  %s1628_s2 = sld [smem:[#allocation24_spill]] }
  0x51   : > { %p1383_p7 = pnand %p814_p6, %p1625_p10  ;;  %s755_s10 = sshll.u32 %s273_s28, 4 }
  0x52   : > { %s1627_s26 = scalar_select %p1387_p5, 1, 0 }
  0x53   : > { %p978_p4 = pneg %p1383_p7 }
  0x56   : > { %s976_s1 = scalar_lea.hbm %s1628_s2, 256 }
  0x57   : > { %p977_p2 = scmp.ne.s32.totalorder %s1628_s2, %s976_s1  ;;  %p983_p6 = scmp.lt.u32.totalorder %s976_s1, %s1628_s2 }
  0x59   : > { %p979_p11 = pnand %p978_p4, %p977_p2 }
  0x5b   : > { %p980_p1 = pneg %p979_p11 }
  0x5d   : > { %p985_p10 = pnand %p983_p6, %p980_p1 }
  0x5f   : > { %988 = shalt.err (!%p985_p10)
}
  0x60   : > { %s989_s28 = scalar_lea.vmem %s1374_s18, 256  ;;  %p997_p12 = scmp.lt.s32.totalorder %s1374_s18, %s1374_s18 }
  0x61   : > { %p990_p13 = scmp.ne.s32.totalorder %s1374_s18, %s989_s28  ;;  %p998_p0 = scmp.lt.s32.totalorder %s989_s28, %s989_s28 }
  0x63   : > { %p992_p8 = pnand %p990_p13, %p978_p4  ;;  %p999_p9 = por %p998_p0, %p997_p12 }
  0x65   : > { %p993_p3 = pneg %p992_p8 }
  0x67   : > { %p1000_p5 = pnand %p999_p9, %p993_p3 }
  0x69   : > { %1003 = shalt.err (!%p1000_p5)
}
  0x6a   : > { %s1629_s15 = smov 4   ;;  %s1630_s12 = smov 64  }
  0x6b   : > { %817 = dma.hbm_to_vmem [thread:$0]  (!%p1383_p7), %s1628_s2, 256, %s1374_s18, [#allocation10], %s1630_s12, %s1630_s12, %s1629_s15  }
  0x6c   : > { %p1631_p0 = scmp.ne.s32.totalorder %s1627_s26, 0  ;;  %p1632_p12 = scmp.eq.s32.totalorder %s1150_s14, 0 }
  0x6d   : > { %p1633_p13 = scmp.ne.s32.totalorder %s1126_s9, %s1122_s8  ;;  %p1635_p5 = scmp.eq.s32.totalorder %s1299_s21, 1 }
  0x6e   : > { %s1421_s30 = scalar_select %p1631_p0, %s1126_s9, %s135_s16  }
  0x6f   : > { %p144_p3 = por %p1633_p13, %p1632_p12  ;;  %p1634_p9 = pmov %p1633_p13 }
  0x70   : > { %s778_s17 = sshll.u32 %s1146_s13, 8  ;;  %s275_s18 = scalar_lea.vmem [#allocation11], %s755_s10 }
  0x71   : > { %p1433_p8 = por %p1635_p5, %p1634_p9  ;;  %s1441_s1 = scalar_lea.hbm %s1595_s4, %s778_s17 }
  0x72   : > { %s282_s16 = sshll.u32 %s275_s18, 4  ;;  %p1637_p7 = scmp.lt.s32.totalorder %s1150_s14, 2  ;;  %s1443_s16 = int_to_ptr.vmem [resolvable:$true] %s282_s16 }
  0x73   : > { %s1004_s29 = scalar_lea.hbm %s1441_s1, 256  ;;  %s1009_s20 = scalar_lea.hbm %s1595_s4, 512 }
  0x74   : > { %p1447_p2 = pnand %p1637_p7, %p144_p3  ;;  %p1005_p4 = scmp.ne.s32.totalorder %s1441_s1, %s1004_s29 }
  0x75   : > { %p1010_p10 = scmp.lt.u32.totalorder %s1441_s1, %s1595_s4  ;;  %p1011_p0 = scmp.lt.u32.totalorder %s1009_s20, %s1004_s29 }
  0x76   : > { %p1006_p11 = pneg %p1447_p2  ;;  %p1013_p13 = scmp.lt.u32.totalorder %s1004_s29, %s1441_s1 }
  0x77   : > { %p1012_p12 = por %p1011_p0, %p1010_p10 }
  0x78   : > { %p1007_p1 = pnand %p1006_p11, %p1005_p4 }
  0x79   : > { %p1014_p3 = por %p1013_p13, %p1012_p12 }
  0x7a   : > { %p1008_p6 = pneg %p1007_p1 }
  0x7c   : > { %p1015_p9 = pnand %p1014_p3, %p1008_p6 }
  0x7e   : > { %1018 = shalt.err (!%p1015_p9)
}
  0x7f   : > { %s1019_s2 = scalar_lea.vmem %s1443_s16, 256  ;;  %s1157_s17 = smov [#allocation11]  }
  0x80   : > { %p1020_p5 = scmp.ne.s32.totalorder %s1443_s16, %s1019_s2  ;;  %s1024_s10 = sshll.u32 %s1157_s17, 4  ;;  %s1025_s10 = int_to_ptr.vmem [resolvable:$false] %s1024_s10 }
  0x81   : > { %s1026_s28 = scalar_lea.vmem %s1025_s10, 512  ;;  %p1027_p1 = scmp.lt.s32.totalorder %s1443_s16, %s1025_s10 }
  0x82   : > { %p1022_p7 = pnand %p1020_p5, %p1006_p11  ;;  %p1028_p10 = scmp.lt.s32.totalorder %s1026_s28, %s1019_s2 }
  0x84   : > { %p1023_p4 = pneg %p1022_p7  ;;  %p1029_p0 = por %p1028_p10, %p1027_p1 }
  0x86   : > { %p1030_p12 = pnand %p1029_p0, %p1023_p4 }
  0x88   : > { %1033 = shalt.err (!%p1030_p12)
}
  0x89   : > { %826 = dma.hbm_to_vmem [thread:$0]  (!%p1447_p2), %s1441_s1, 256, %s1443_s16, %s1318_s25, %s1630_s12, %s1630_s12, %s1629_s15  }
  0x8a   : > { %p1639_p11 = scmp.ne.s32.totalorder %s1624_s27, 0 }
  0x8b   : > { %s302_s29 = sand.u32 (!%p1639_p11), 1, %s1299_s21   ;;  %s304_s2 = sand.u32 (!%p1639_p11), 1, %s1134_s11  }
  0x8c   : > { %300 = sbr.rel (%p1639_p11) target bundleno = 982 (0x3d6), region = 40  ;;  %s759_s20 = sshll.u32 (!%p1639_p11), %s304_s2, 3 }
  0x8d   : > { %s303_s18 = scalar_lea.sflag (!%p1639_p11), [#allocation7], %s302_s29  ;;  %s306_s17 = scalar_lea.vmem (!%p1639_p11), [#allocation6], %s759_s20 }
  0x8e   : > { %p1640_p6 = scmp.ne.s32.totalorder (!%p1639_p11), %s1618_s24, 0 }
  0x93   : > { %1101 = dma.done.wait (%p1640_p6), %s303_s18, 128  }
  0x94   : > { %1103 = vsyncadd (%p1640_p6), %s303_s18, 4294967168  ;;  %p1641_p13 = scmp.eq.s32.totalorder %s1299_s21, 0 }
  0x96   : > { %1105 = dma.done.wait (%p1641_p13), [#allocation10], 256   ;;  %p1642_p2 = pmov %p1641_p13 }
  0x97   : > { %s317_s25 = sand.u32 1, %s1122_s8   ;;  %p1643_p3 = scmp.ne.s32.totalorder %s1621_s19, 0 }
  0x98   : > { %1107 = vsyncadd (%p1642_p2), [#allocation10], 4294967040  ;;  %s1495_s27 = sshll.u32 %s317_s25, 4 }
  0x99   : > { %s319_s15 = scalar_lea.vmem [#allocation11], %s1495_s27 }
  0x9a   : > { %1109 = dma.done.wait (%p1643_p3), %s303_s18, 256  }
  0x9b   : > { %1111 = vsyncadd (%p1643_p3), %s303_s18, 4294967040  ;;  %v1158_v0 = vmov 0.0   ;;  %vm1159_vm0 = vmmov 0   ;;  %v919_v1 = vld [vmem:[#allocation9] sm:$0xff]   ;;  %v920_v2 = vld [vmem:[#allocation9 + $0x8] sm:$0xff]   ;;  %vm397_vm1 = vcmask 261120  }
  0x9c   : > { %786 = vmatprep.subr.bf16.mxu0 %v1158_v0  ;;  %790 = vmatprep.mubr.msk.bf16.mxu0 %vm1159_vm0, %v1158_v0  ;;  %v921_v3 = vld [vmem:[%s306_s17] sm:$0xff]   ;;  %vm450_vm2 = vcmask 7168   ;;  %v1160_v4 = vmov -1e+30   ;;  %v763_v5 = vld [vmem:[%s1594_s3] ss:$0 sm:$0xff] }
  0x9d   : > { %794 = vmatprep.subr.bf16.mxu1 %v1158_v0  ;;  %798 = vmatprep.mubr.msk.bf16.mxu1 %vm1159_vm0, %v1158_v0  ;;  %451 = vst.msk [vmem:[#allocation2] sm:$0xff] %vm450_vm2, %v1160_v4  ;;  %452 = vst.msk [vmem:[#allocation2 + $0x8] sm:$0xff] %vm450_vm2, %v1160_v4  ;;  %v1161_v12 = vmov 0   ;;  %v922_v21 = vld [vmem:[%s319_s15] sm:$0xff]   ;;  %v923_v22 = vld [vmem:[%s319_s15 + $0x8] sm:$0xff]   ;;  %p362_p9 = scmp.lt.s32.totalorder %s1142_s0, 1 }
  0x9e   : > { %787 = vmatpush3.bf16.msra.mxu0 %v919_v1  ;;  %453 = vst.msk [vmem:[#allocation3] sm:$0xff] %vm450_vm2, %v1158_v0  ;;  %454 = vst.msk [vmem:[#allocation3 + $0x8] sm:$0xff] %vm450_vm2, %v1158_v0  ;;  %917 = vset.pattern.permute.xlu1 %v1161_v12  ;;  %s356_s26 = scalar_lea.vmem [#allocation12], %s1495_s27  ;;  %s779_s28 = sshll.u32 %s1142_s0, 8 }
  0x9f   : > { %788 = vmatprep.subr.bf16.mxu0 %v1158_v0  ;;  %918 = vset.pattern.permute.xlu0 %v1161_v12  ;;  %s363_s19 = scalar_select %p362_p9, %s1142_s0, 1 }
  0xa0   : > { %795 = vmatpush3.bf16.msra.mxu1 %v922_v21  ;;  %s603_s10 = sshll.u32 %s356_s26, 4  ;;  %s1531_s20 = scalar_lea.hbm %s1597_s6, %s779_s28  ;;  %s1526_s10 = int_to_ptr.vmem [resolvable:$true] %s603_s10 }
  0xa1   : > { %796 = vmatprep.subr.bf16.mxu1 %v1158_v0  ;;  %s364_s16 = scalar_lea.vmem %s1596_s5, %s363_s19  ;;  %s1535_s18 = scalar_lea.sflag [#allocation8], %s317_s25 }
  0xa2   : > { %789 = vmatpush3.bf16.msra.mxu0 %v920_v2  ;;  %v768_v57 = vld [vmem:[%s364_s16] ss:$0 sm:$0xff]  ;;  %s1034_s17 = scalar_lea.vmem %s1526_s10, 256  ;;  %s1162_s0 = smov [#allocation12]  }
  0xa3   : > { %p1035_p5 = scmp.ne.s32.totalorder %s1526_s10, %s1034_s17  ;;  %s1038_s27 = sshll.u32 %s1162_s0, 4  ;;  %s1039_s27 = int_to_ptr.vmem [resolvable:$false] %s1038_s27 }
  0xa4   : > { %v455_v13 = vld [vmem:[#allocation2] sm:$0xff]  ;;  %v456_v16 = vld [vmem:[#allocation2 + $0x8] sm:$0xff]  ;;  %797 = vmatpush3.bf16.msra.mxu1 %v923_v22  ;;  %s1040_s15 = scalar_lea.vmem %s1039_s27, 512  ;;  %p1041_p1 = scmp.lt.s32.totalorder %s1526_s10, %s1039_s27 }
  0xa5   : > { %791 = vmatmul.mubr.msk.bf16.vlgmr.msra.gmra.mrb[0].mxu0 %vm397_vm1, %v921_v3  ;;  %v459_v38 = vld [vmem:[#allocation3] sm:$0xff]  ;;  %v460_v42 = vld [vmem:[#allocation3 + $0x8] sm:$0xff]  ;;  %p1036_p7 = pnand %p1035_p5, %p1433_p8  ;;  %p1042_p10 = scmp.lt.s32.totalorder %s1040_s15, %s1034_s17 }
  0xa7   : > { %799 = vmatmul.mubr.msk.bf16.vlgmr.msra.gmra.mrb[0].mxu1 %vm397_vm1, %v921_v3  ;;  %p1037_p4 = pneg %p1036_p7  ;;  %p1043_p0 = por %p1042_p10, %p1041_p1 }
  0xa9   : > { %p1044_p12 = pnand %p1043_p0, %p1037_p4 }
 0x178   : > { %v435_v6 = vpop.f32.mrb[0].mxu0 }
 0x179   : > { %v436_v7 = vadd.f32 %v763_v5, %v435_v6  ;;  %v792_v8 = vpop.f32.mrb[1].mxu0 }
 0x17a   : > { %v438_v9 = vpop.f32.mrb[2].mxu0  ;;  %v556_v31 = vpop.f32.mrb[0].mxu1 }
 0x17b   : > { %442 = vmax.xlane.f32.xlu0 %v436_v7  ;;  %v793_v10 = vpop.f32.mrb[3].mxu0  ;;  %v439_v11 = vadd.f32 %v763_v5, %v438_v9  ;;  %v800_v32 = vpop.f32.mrb[1].mxu1  ;;  %v557_v58 = vadd.f32 %v768_v57, %v556_v31 }
 0x17c   : > { %v559_v33 = vpop.f32.mrb[2].mxu1 }
 0x17d   : > { %v801_v34 = vpop.f32.mrb[3].mxu1  ;;  %v560_v61 = vadd.f32 %v768_v57, %v559_v33 }
 0x17f   : > { %444 = vmax.xlane.f32.xlu0 %v439_v11 }
 0x208   : > { %v443_v14 = vpop.xlane.xlu0 %442 }
 0x209   : > { %v457_v15 = vmax.f32 %v455_v13, %v443_v14 }
 0x20b   : > { %v461_v17 = vsub.f32 %v455_v13, %v457_v15  ;;  %494 = vst.msk [vmem:[#allocation2] sm:$0xff] %vm450_vm2, %v457_v15  ;;  %471 = vperm.xlu1 %917, %v457_v15  }
 0x20c   : > { %v445_v18 = vpop.xlane.xlu0 %444 }
 0x20d   : > { %v458_v19 = vmax.f32 %v456_v16, %v445_v18  ;;  %v463_v35 = vmul.f32 1.442695, %v461_v17 }
 0x20f   : > { %v462_v20 = vsub.f32 %v456_v16, %v458_v19  ;;  %495 = vst.msk [vmem:[#allocation2 + $0x8] sm:$0xff] %vm450_vm2, %v458_v19  ;;  %476 = vperm.xlu1 %917, %v458_v19  }
 0x211   : > { %v465_v36 = vmul.f32 1.442695, %v462_v20 }
 0x212   : > { %v563_v51 = vld [vmem:[#allocation2] sm:$0xff] }
 0x216   : > { %v564_v55 = vld [vmem:[#allocation2 + $0x8] sm:$0xff] }
 0x28a   : > { %v472_v23 = vpop.permute.xlu1 %471 }
 0x28b   : > { %v479_v24 = vsub.f32 %v436_v7, %v472_v23 }
 0x28d   : > { %v481_v25 = vmul.f32 1.442695, %v479_v24 }
 0x28e   : > { %v477_v26 = vpop.permute.xlu1 %476 }
 0x28f   : > { %924 = vpow2.f32 %v481_v25  ;;  %v480_v27 = vsub.f32 %v439_v11, %v477_v26 }
 0x291   : > { %v483_v28 = vmul.f32 1.442695, %v480_v27 }
 0x293   : > { %926 = vpow2.f32 %v483_v28 }
 0x294   : > { %928 = vpow2.f32 %v463_v35 }
 0x295   : > { %930 = vpow2.f32 %v465_v36 }
 0x299   : > { %v925_v29 = vpop.eup %924 }
 0x29a   : > { %485 = vadd.xlane.f32.xlu0 %v925_v29 }
 0x29d   : > { %v927_v30 = vpop.eup %926 }
 0x29e   : > { %487 = vadd.xlane.f32.xlu1 %v927_v30  ;;  %v929_v37 = vpop.eup %928 }
 0x29f   : > { %v467_v39 = vmul.f32 %v929_v37, %v459_v38  ;;  %v931_v40 = vpop.eup %930 }
 0x2a0   : > { %v468_v44 = vmul.f32 %v931_v40, %v460_v42 }
 0x327   : > { %v486_v41 = vpop.xlane.xlu0 %485 }
 0x328   : > { %v489_v43 = vadd.f32 %v486_v41, %v467_v39 }
 0x32a   : > { %492 = vst.msk [vmem:[#allocation3] sm:$0xff] %vm450_vm2, %v489_v43 }
 0x32b   : > { %v488_v45 = vpop.xlane.xlu1 %487 }
 0x32c   : > { %v490_v46 = vadd.f32 %v488_v45, %v468_v44 }
 0x32e   : > { %493 = vst.msk [vmem:[#allocation3 + $0x8] sm:$0xff] %vm450_vm2, %v490_v46 }
 0x331   : > { %v565_v47 = vld [vmem:[#allocation3] sm:$0xff] }
 0x332   : > { %932 = vlog2.f32 %v565_v47 }
 0x335   : > { %v566_v48 = vld [vmem:[#allocation3 + $0x8] sm:$0xff] }
 0x336   : > { %934 = vlog2.f32 %v566_v48 }
 0x33c   : > { %v933_v49 = vpop.eup %932 }
 0x33d   : > { %v568_v50 = vmul.f32 0.6931472, %v933_v49 }
 0x33f   : > { %v571_v52 = vadd.f32 %v568_v50, %v563_v51 }
 0x340   : > { %v935_v53 = vpop.eup %934 }
 0x341   : > { %575 = vperm.xlu0 %918, %v571_v52   ;;  %v570_v54 = vmul.f32 0.6931472, %v935_v53 }
 0x343   : > { %v572_v56 = vadd.f32 %v570_v54, %v564_v55 }
 0x345   : > { %580 = vperm.xlu1 %917, %v572_v56  }
 0x3c0   : > { %v576_v59 = vpop.permute.xlu0 %575 }
 0x3c1   : > { %v583_v60 = vsub.f32 %v557_v58, %v576_v59 }
 0x3c3   : > { %585 = vst [vmem:[%s356_s26] sm:$0xff] %v583_v60 }
 0x3c4   : > { %v581_v62 = vpop.permute.xlu1 %580 }
 0x3c5   : > { %v584_v63 = vsub.f32 %v560_v61, %v581_v62 }
 0x3c7   : > { %586 = vst [vmem:[%s356_s26 + $0x8] sm:$0xff] %v584_v63 }
 0x3c8   : > { %1047 = shalt.err (!%p1044_p12)
}
 0x3c9   : > { %s1048_s25 = scalar_lea.hbm %s1531_s20, 256  ;;  %s1052_s19 = scalar_lea.hbm %s1597_s6, 2048 }
 0x3ca   : > { %p1049_p11 = scmp.ne.s32.totalorder %s1531_s20, %s1048_s25  ;;  %p1053_p2 = scmp.lt.u32.totalorder %s1531_s20, %s1597_s6 }
 0x3cb   : > { %p1054_p3 = scmp.lt.u32.totalorder %s1052_s19, %s1048_s25  ;;  %p1056_p5 = scmp.lt.u32.totalorder %s1048_s25, %s1531_s20 }
 0x3cc   : > { %p1050_p6 = pnand %p1049_p11, %p1433_p8 }
 0x3cd   : > { %p1055_p9 = por %p1054_p3, %p1053_p2 }
 0x3ce   : > { %p1051_p13 = pneg %p1050_p6 }
 0x3cf   : > { %p1057_p7 = por %p1056_p5, %p1055_p9 }
 0x3d1   : > { %p1058_p4 = pnand %p1057_p7, %p1051_p13 }
 0x3d3   : > { %1061 = shalt.err (!%p1058_p4)
}
 0x3d4   : > { %s1163_s16 = smov 128   ;;  %s1164_s26 = smov 8  }
 0x3d5   : > { %812 = dma.vmem_to_hbm [thread:$0]  (%p1433_p8), %s1526_s10, 256, %s1531_s20, %s1535_s18, %s1163_s16, %s1163_s16, %s1164_s26  }
 0x3d6 PF: > { %s618_s28 = sand.u32 1, %s1118_s7   ;;  %p1644_p1 = scmp.ne.s32.totalorder %s1623_s23, 0 }
 0x3d7   : > { %p1645_p10 = scmp.ge.s32.totalorder %s1150_s14, 2  ;;  %s619_s29 = scalar_lea.sflag [#allocation8], %s618_s28 }
 0x3d9   : > { %p828_p0 = pnand %p1645_p10, %p1644_p1 }
 0x3db   : > { %1113 = dma.done.wait (!%p828_p0), %s619_s29, 256  }
 0x3dc   : > { %1115 = vsyncadd (!%p828_p0), %s619_s29, 4294967040  ;;  %s27_s14 = sadd.s32 1, %s1150_s14   ;;  %s1646_s22 = sld [smem:[#allocation20_spill]] }
 0x3dd   : > { %p24_p12 = scmp.ge.s32.totalorder %s27_s14, 4   ;;  %s1647_s12 = sld [smem:[#allocation22_spill]] }
 0x3de   : > { %s1648_s2 = sld [smem:[#allocation21_spill]]  ;;  %s1649_s7 = smov %s1122_s8 }
 0x3df   : > { %s1650_s8 = smov %s1126_s9  ;;  %s1651_s9 = smov %s1421_s30 }
 0x3e0   : > { %s1652_s10 = smov %s1134_s11  ;;  %s1654_s0 = smov %s1146_s13 }
 0x3e1   :  { %26 = sbr.rel (!%p24_p12) target bundleno = 22 (0x16), region = 115 }
 0x3e2   : > { %s1653_s11 = smov %s1646_s22 }
 0x3e4   : > { %s1655_s13 = smov %s1648_s2 }
 0x3e8   :  { %624 = vsyncpa [#allocation7], 1 }
 0x3e9   :  { %626 = vsyncpa [#allocation7 + $0x1], 1 }
 0x3ea   :  { %627 = vsyncpa [#allocation10], 1 }
 0x3eb   :  { %628 = vsyncpa [#allocation8], 1 }
 0x3ec   :  { %630 = vsyncpa [#allocation8 + $0x1], 1 }

</bundles_post_ra>
